<compile_context>
chip_gen: v7x
topology: tpu7x:2x2x1
jax: 0.10.0
libtpu: 0.0.40
codegen_flags: <defaults>
</compile_context>

<pallas_src>
import jax
import jax.numpy as jnp
from jax.experimental import pallas as pl
from jax.experimental.pallas import tpu as pltpu

N = 16           # number of nodes (must be divisible by 4: two row-halvings)
F = 128          # feature dim ("in_out" of the PyTorch module)
DROPOUT_P = 0.5  # F.dropout default (training=True) semantics


def _stage(x, G, simW, W, b, u, p):
    """mamba -> matmul(sim) -> HGNN_conv -> fused relu+dropout, one level."""
    # TODO(synk): mamba_block definition not provided in the source repo; using
    # a deterministic SiLU-gated stand-in (output1 = silu(x), output2 = x).
    o1 = x * (1.0 / (1.0 + jnp.exp(-x)))          # silu(x)
    o2 = x
    # (o1 @ sim + o2) @ W + b  ==  o1 @ (sim @ W) + o2 @ W + b
    h = (jnp.dot(o1, simW, preferred_element_type=jnp.float32)
         + jnp.dot(o2, W, preferred_element_type=jnp.float32)
         + b)
    h = jnp.dot(G, h, preferred_element_type=jnp.float32)
    # fused relu + inverted dropout (keep prob = 1 - p, scale = 1/(1-p))
    keep = (u < (1.0 - p)) & (h > 0.0)
    return jnp.where(keep, h * (1.0 / (1.0 - p)), jnp.zeros_like(h))


def hgnn_kernel(x_ref, g_ref,
                p1_ref, p1t_ref, p2_ref, p2t_ref,
                sw1_ref, w1_ref, b1_ref,
                sw2_ref, w2_ref, b2_ref,
                sw3_ref, w3_ref, b3_ref,
                u1_ref, u2_ref, u3_ref,
                out_ref):
    p = DROPOUT_P
    x = x_ref[...]
    G = g_ref[...]

    # ---- level 1 -------------------------------------------------------
    x_hg = _stage(x, G, sw1_ref[...], w1_ref[...], b1_ref[...], u1_ref[...], p)

    P1 = p1_ref[...]       # (N/2, N), 0.5 folded in
    P1T = p1t_ref[...]     # (N, N/2), 0.5 folded in
    # AvgPool2d((2,1)) on x_hg  -> average adjacent rows   = P1 @ x_hg
    x_half_1 = jnp.dot(P1, x_hg, preferred_element_type=jnp.float32)
    # AvgPool2d(2) on G         -> 2x2 block average       = P1 @ G @ P1^T
    G_half_1 = jnp.dot(jnp.dot(P1, G, preferred_element_type=jnp.float32),
                       P1T, preferred_element_type=jnp.float32)

    # ---- level 2 -------------------------------------------------------
    x1_hg = _stage(x_half_1, G_half_1,
                   sw2_ref[...], w2_ref[...], b2_ref[...], u2_ref[...], p)

    P2 = p2_ref[...]       # (N/4, N/2), 0.5 folded in
    P2T = p2t_ref[...]     # (N/2, N/4), 0.5 folded in
    x_half_2 = jnp.dot(P2, x1_hg, preferred_element_type=jnp.float32)
    G_half_2 = jnp.dot(jnp.dot(P2, G_half_1, preferred_element_type=jnp.float32),
                       P2T, preferred_element_type=jnp.float32)

    # ---- level 3 -------------------------------------------------------
    x2_hg = _stage(x_half_2, G_half_2,
                   sw3_ref[...], w3_ref[...], b3_ref[...], u3_ref[...], p)

    out_ref[...] = x2_hg.astype(out_ref.dtype)


def _pool_matrix(half, full, dtype):
    """Averaging-pool selection matrix with the 0.5 scale folded in."""
    r = jnp.arange(half)[:, None]
    c = jnp.arange(full)[None, :]
    P = ((c // 2) == r).astype(dtype) * 0.5
    return P, P.T


@jax.jit
def hgnn_forward(dropout_key, x, G, sim, W1, b1, W2, b2, W3, b3):
    n, f = x.shape
    dt = jnp.float32

    # Algebraic precompute: sim @ W_k (once, outside the kernel).
    simW1 = jnp.dot(sim, W1, preferred_element_type=dt)
    simW2 = jnp.dot(sim, W2, preferred_element_type=dt)
    simW3 = jnp.dot(sim, W3, preferred_element_type=dt)

    # Pooling selection matrices (0.5 scale folded in; P G P^T gets 0.25).
    P1, P1T = _pool_matrix(n // 2, n, dt)
    P2, P2T = _pool_matrix(n // 4, n // 2, dt)

    # One batch of dropout uniforms for all three stages.
    k1, k2, k3 = jax.random.split(dropout_key, 3)
    u1 = jax.random.uniform(k1, (n, f), dt)
    u2 = jax.random.uniform(k2, (n // 2, f), dt)
    u3 = jax.random.uniform(k3, (n // 4, f), dt)

    vmem = pl.BlockSpec(memory_space=pltpu.MemorySpace.VMEM)
    return pl.pallas_call(
        hgnn_kernel,
        out_shape=jax.ShapeDtypeStruct((n // 4, f), dt),
        in_specs=[vmem] * 18,
        out_specs=vmem,
    )(x, G, P1, P1T, P2, P2T,
      simW1, W1, b1, simW2, W2, b2, simW3, W3, b3,
      u1, u2, u3)


def init_hgnn_conv_params(key, in_ft, out_ft):
    """Init mirroring HGNN_conv: uniform(-stdv, stdv), stdv = 1/sqrt(out_ft)."""
    stdv = 1.0 / (out_ft ** 0.5)
    kw, kb = jax.random.split(key)
    W = jax.random.uniform(kw, (in_ft, out_ft), jnp.float32, -stdv, stdv)
    b = jax.random.uniform(kb, (1, out_ft), jnp.float32, -stdv, stdv)
    return W, b


if __name__ == "__main__":
    key = jax.random.PRNGKey(0)
    kx, kg, ks, k1, k2, k3, kd = jax.random.split(key, 7)

    x = jax.random.normal(kx, (N, F), jnp.float32)                 # node features
    G = jax.random.normal(kg, (N, N), jnp.float32) / (N ** 0.5)    # hypergraph Laplacian
    sim = jax.random.normal(ks, (F, F), jnp.float32) / (F ** 0.5)  # similarity matrix

    W1, b1 = init_hgnn_conv_params(k1, F, F)
    W2, b2 = init_hgnn_conv_params(k2, F, F)
    W3, b3 = init_hgnn_conv_params(k3, F, F)

    out = hgnn_forward(kd, x, G, sim, W1, b1, W2, b2, W3, b3)
    out = jax.block_until_ready(out)

    assert out.shape == (N // 4, F), out.shape
    assert bool(jnp.all(jnp.isfinite(out)))
    print("KERNEL_OK")
</pallas_src>

<mosaic_0001>
module attributes {stable_mosaic.version = 11 : i64} {
  func.func @hgnn_kernel(%arg0: memref<16x128xf32, #tpu.memory_space<vmem>>, %arg1: memref<16x16xf32, #tpu.memory_space<vmem>>, %arg2: memref<8x16xf32, #tpu.memory_space<vmem>>, %arg3: memref<16x8xf32, #tpu.memory_space<vmem>>, %arg4: memref<4x8xf32, #tpu.memory_space<vmem>>, %arg5: memref<8x4xf32, #tpu.memory_space<vmem>>, %arg6: memref<128x128xf32, #tpu.memory_space<vmem>>, %arg7: memref<128x128xf32, #tpu.memory_space<vmem>>, %arg8: memref<1x128xf32, #tpu.memory_space<vmem>>, %arg9: memref<128x128xf32, #tpu.memory_space<vmem>>, %arg10: memref<128x128xf32, #tpu.memory_space<vmem>>, %arg11: memref<1x128xf32, #tpu.memory_space<vmem>>, %arg12: memref<128x128xf32, #tpu.memory_space<vmem>>, %arg13: memref<128x128xf32, #tpu.memory_space<vmem>>, %arg14: memref<1x128xf32, #tpu.memory_space<vmem>>, %arg15: memref<16x128xf32, #tpu.memory_space<vmem>>, %arg16: memref<8x128xf32, #tpu.memory_space<vmem>>, %arg17: memref<4x128xf32, #tpu.memory_space<vmem>>, %arg18: memref<4x128xf32, #tpu.memory_space<vmem>>) attributes {dimension_semantics = [], scalar_prefetch = 0 : i64, scratch_operands = 0 : i64, tpu.core_type = #tpu.core_type<tc>} {
    %c0 = arith.constant 0 : index
    %c0_0 = arith.constant 0 : index
    %0 = vector.load %arg0[%c0, %c0_0] : memref<16x128xf32, #tpu.memory_space<vmem>>, vector<16x128xf32>
    %c0_1 = arith.constant 0 : index
    %c0_2 = arith.constant 0 : index
    %1 = vector.load %arg1[%c0_1, %c0_2] : memref<16x16xf32, #tpu.memory_space<vmem>>, vector<16x16xf32>
    %c0_3 = arith.constant 0 : index
    %c0_4 = arith.constant 0 : index
    %2 = vector.load %arg6[%c0_3, %c0_4] : memref<128x128xf32, #tpu.memory_space<vmem>>, vector<128x128xf32>
    %c0_5 = arith.constant 0 : index
    %c0_6 = arith.constant 0 : index
    %3 = vector.load %arg7[%c0_5, %c0_6] : memref<128x128xf32, #tpu.memory_space<vmem>>, vector<128x128xf32>
    %c0_7 = arith.constant 0 : index
    %c0_8 = arith.constant 0 : index
    %4 = vector.load %arg8[%c0_7, %c0_8] : memref<1x128xf32, #tpu.memory_space<vmem>>, vector<1x128xf32>
    %c0_9 = arith.constant 0 : index
    %c0_10 = arith.constant 0 : index
    %5 = vector.load %arg15[%c0_9, %c0_10] : memref<16x128xf32, #tpu.memory_space<vmem>>, vector<16x128xf32>
    %cst = arith.constant 0.000000e+00 : f32
    %6 = vector.broadcast %cst : f32 to vector<16x128xf32>
    %7 = arith.subf %6, %0 : vector<16x128xf32>
    %8 = math.exp %7 : vector<16x128xf32>
    %cst_11 = arith.constant 1.000000e+00 : f32
    %9 = vector.broadcast %cst_11 : f32 to vector<16x128xf32>
    %10 = arith.addf %9, %8 : vector<16x128xf32>
    %cst_12 = arith.constant 1.000000e+00 : f32
    %11 = vector.broadcast %cst_12 : f32 to vector<16x128xf32>
    %12 = arith.divf %11, %10 : vector<16x128xf32>
    %13 = arith.mulf %0, %12 : vector<16x128xf32>
    %cst_13 = arith.constant dense<0.000000e+00> : vector<16x128xf32>
    %14 = tpu.matmul %13, %2, %cst_13 {dimension_numbers = #tpu.dot_dimension_numbers<[1], [0], [0], [1], [0, 0, 1, 1], [], []>} : vector<16x128xf32>, vector<128x128xf32>, vector<16x128xf32> -> vector<16x128xf32>
    %cst_14 = arith.constant dense<0.000000e+00> : vector<16x128xf32>
    %15 = tpu.matmul %0, %3, %cst_14 {dimension_numbers = #tpu.dot_dimension_numbers<[1], [0], [0], [1], [0, 0, 1, 1], [], []>} : vector<16x128xf32>, vector<128x128xf32>, vector<16x128xf32> -> vector<16x128xf32>
    %16 = arith.addf %14, %15 : vector<16x128xf32>
    %17 = vector.broadcast %4 : vector<1x128xf32> to vector<16x128xf32>
    %18 = arith.addf %16, %17 : vector<16x128xf32>
    %cst_15 = arith.constant dense<0.000000e+00> : vector<16x128xf32>
    %19 = tpu.matmul %1, %18, %cst_15 {dimension_numbers = #tpu.dot_dimension_numbers<[1], [0], [0], [1], [0, 0, 1, 1], [], []>} : vector<16x16xf32>, vector<16x128xf32>, vector<16x128xf32> -> vector<16x128xf32>
    %cst_16 = arith.constant 5.000000e-01 : f32
    %20 = vector.broadcast %cst_16 : f32 to vector<16x128xf32>
    %21 = arith.cmpf olt, %5, %20 : vector<16x128xf32>
    %cst_17 = arith.constant 0.000000e+00 : f32
    %22 = vector.broadcast %cst_17 : f32 to vector<16x128xf32>
    %23 = arith.cmpf ogt, %19, %22 : vector<16x128xf32>
    %24 = arith.andi %21, %23 : vector<16x128xi1>
    %cst_18 = arith.constant 2.000000e+00 : f32
    %25 = vector.broadcast %cst_18 : f32 to vector<16x128xf32>
    %26 = arith.mulf %19, %25 : vector<16x128xf32>
    %cst_19 = arith.constant 0.000000e+00 : f32
    %27 = vector.broadcast %cst_19 : f32 to vector<16x128xf32>
    %28 = arith.select %24, %26, %27 : vector<16x128xi1>, vector<16x128xf32>
    %c0_20 = arith.constant 0 : index
    %c0_21 = arith.constant 0 : index
    %29 = vector.load %arg2[%c0_20, %c0_21] : memref<8x16xf32, #tpu.memory_space<vmem>>, vector<8x16xf32>
    %c0_22 = arith.constant 0 : index
    %c0_23 = arith.constant 0 : index
    %30 = vector.load %arg3[%c0_22, %c0_23] : memref<16x8xf32, #tpu.memory_space<vmem>>, vector<16x8xf32>
    %cst_24 = arith.constant dense<0.000000e+00> : vector<8x128xf32>
    %31 = tpu.matmul %29, %28, %cst_24 {dimension_numbers = #tpu.dot_dimension_numbers<[1], [0], [0], [1], [0, 0, 1, 1], [], []>} : vector<8x16xf32>, vector<16x128xf32>, vector<8x128xf32> -> vector<8x128xf32>
    %cst_25 = arith.constant dense<0.000000e+00> : vector<8x16xf32>
    %32 = tpu.matmul %29, %1, %cst_25 {dimension_numbers = #tpu.dot_dimension_numbers<[1], [0], [0], [1], [0, 0, 1, 1], [], []>} : vector<8x16xf32>, vector<16x16xf32>, vector<8x16xf32> -> vector<8x16xf32>
    %cst_26 = arith.constant dense<0.000000e+00> : vector<8x8xf32>
    %33 = tpu.matmul %32, %30, %cst_26 {dimension_numbers = #tpu.dot_dimension_numbers<[1], [0], [0], [1], [0, 0, 1, 1], [], []>} : vector<8x16xf32>, vector<16x8xf32>, vector<8x8xf32> -> vector<8x8xf32>
    %c0_27 = arith.constant 0 : index
    %c0_28 = arith.constant 0 : index
    %34 = vector.load %arg9[%c0_27, %c0_28] : memref<128x128xf32, #tpu.memory_space<vmem>>, vector<128x128xf32>
    %c0_29 = arith.constant 0 : index
    %c0_30 = arith.constant 0 : index
    %35 = vector.load %arg10[%c0_29, %c0_30] : memref<128x128xf32, #tpu.memory_space<vmem>>, vector<128x128xf32>
    %c0_31 = arith.constant 0 : index
    %c0_32 = arith.constant 0 : index
    %36 = vector.load %arg11[%c0_31, %c0_32] : memref<1x128xf32, #tpu.memory_space<vmem>>, vector<1x128xf32>
    %c0_33 = arith.constant 0 : index
    %c0_34 = arith.constant 0 : index
    %37 = vector.load %arg16[%c0_33, %c0_34] : memref<8x128xf32, #tpu.memory_space<vmem>>, vector<8x128xf32>
    %cst_35 = arith.constant 0.000000e+00 : f32
    %38 = vector.broadcast %cst_35 : f32 to vector<8x128xf32>
    %39 = arith.subf %38, %31 : vector<8x128xf32>
    %40 = math.exp %39 : vector<8x128xf32>
    %cst_36 = arith.constant 1.000000e+00 : f32
    %41 = vector.broadcast %cst_36 : f32 to vector<8x128xf32>
    %42 = arith.addf %41, %40 : vector<8x128xf32>
    %cst_37 = arith.constant 1.000000e+00 : f32
    %43 = vector.broadcast %cst_37 : f32 to vector<8x128xf32>
    %44 = arith.divf %43, %42 : vector<8x128xf32>
    %45 = arith.mulf %31, %44 : vector<8x128xf32>
    %cst_38 = arith.constant dense<0.000000e+00> : vector<8x128xf32>
    %46 = tpu.matmul %45, %34, %cst_38 {dimension_numbers = #tpu.dot_dimension_numbers<[1], [0], [0], [1], [0, 0, 1, 1], [], []>} : vector<8x128xf32>, vector<128x128xf32>, vector<8x128xf32> -> vector<8x128xf32>
    %cst_39 = arith.constant dense<0.000000e+00> : vector<8x128xf32>
    %47 = tpu.matmul %31, %35, %cst_39 {dimension_numbers = #tpu.dot_dimension_numbers<[1], [0], [0], [1], [0, 0, 1, 1], [], []>} : vector<8x128xf32>, vector<128x128xf32>, vector<8x128xf32> -> vector<8x128xf32>
    %48 = arith.addf %46, %47 : vector<8x128xf32>
    %49 = vector.broadcast %36 : vector<1x128xf32> to vector<8x128xf32>
    %50 = arith.addf %48, %49 : vector<8x128xf32>
    %cst_40 = arith.constant dense<0.000000e+00> : vector<8x128xf32>
    %51 = tpu.matmul %33, %50, %cst_40 {dimension_numbers = #tpu.dot_dimension_numbers<[1], [0], [0], [1], [0, 0, 1, 1], [], []>} : vector<8x8xf32>, vector<8x128xf32>, vector<8x128xf32> -> vector<8x128xf32>
    %cst_41 = arith.constant 5.000000e-01 : f32
    %52 = vector.broadcast %cst_41 : f32 to vector<8x128xf32>
    %53 = arith.cmpf olt, %37, %52 : vector<8x128xf32>
    %cst_42 = arith.constant 0.000000e+00 : f32
    %54 = vector.broadcast %cst_42 : f32 to vector<8x128xf32>
    %55 = arith.cmpf ogt, %51, %54 : vector<8x128xf32>
    %56 = arith.andi %53, %55 : vector<8x128xi1>
    %cst_43 = arith.constant 2.000000e+00 : f32
    %57 = vector.broadcast %cst_43 : f32 to vector<8x128xf32>
    %58 = arith.mulf %51, %57 : vector<8x128xf32>
    %cst_44 = arith.constant 0.000000e+00 : f32
    %59 = vector.broadcast %cst_44 : f32 to vector<8x128xf32>
    %60 = arith.select %56, %58, %59 : vector<8x128xi1>, vector<8x128xf32>
    %c0_45 = arith.constant 0 : index
    %c0_46 = arith.constant 0 : index
    %61 = vector.load %arg4[%c0_45, %c0_46] : memref<4x8xf32, #tpu.memory_space<vmem>>, vector<4x8xf32>
    %c0_47 = arith.constant 0 : index
    %c0_48 = arith.constant 0 : index
    %62 = vector.load %arg5[%c0_47, %c0_48] : memref<8x4xf32, #tpu.memory_space<vmem>>, vector<8x4xf32>
    %cst_49 = arith.constant dense<0.000000e+00> : vector<4x128xf32>
    %63 = tpu.matmul %61, %60, %cst_49 {dimension_numbers = #tpu.dot_dimension_numbers<[1], [0], [0], [1], [0, 0, 1, 1], [], []>} : vector<4x8xf32>, vector<8x128xf32>, vector<4x128xf32> -> vector<4x128xf32>
    %cst_50 = arith.constant dense<0.000000e+00> : vector<4x8xf32>
    %64 = tpu.matmul %61, %33, %cst_50 {dimension_numbers = #tpu.dot_dimension_numbers<[1], [0], [0], [1], [0, 0, 1, 1], [], []>} : vector<4x8xf32>, vector<8x8xf32>, vector<4x8xf32> -> vector<4x8xf32>
    %cst_51 = arith.constant dense<0.000000e+00> : vector<4x4xf32>
    %65 = tpu.matmul %64, %62, %cst_51 {dimension_numbers = #tpu.dot_dimension_numbers<[1], [0], [0], [1], [0, 0, 1, 1], [], []>} : vector<4x8xf32>, vector<8x4xf32>, vector<4x4xf32> -> vector<4x4xf32>
    %c0_52 = arith.constant 0 : index
    %c0_53 = arith.constant 0 : index
    %66 = vector.load %arg12[%c0_52, %c0_53] : memref<128x128xf32, #tpu.memory_space<vmem>>, vector<128x128xf32>
    %c0_54 = arith.constant 0 : index
    %c0_55 = arith.constant 0 : index
    %67 = vector.load %arg13[%c0_54, %c0_55] : memref<128x128xf32, #tpu.memory_space<vmem>>, vector<128x128xf32>
    %c0_56 = arith.constant 0 : index
    %c0_57 = arith.constant 0 : index
    %68 = vector.load %arg14[%c0_56, %c0_57] : memref<1x128xf32, #tpu.memory_space<vmem>>, vector<1x128xf32>
    %c0_58 = arith.constant 0 : index
    %c0_59 = arith.constant 0 : index
    %69 = vector.load %arg17[%c0_58, %c0_59] : memref<4x128xf32, #tpu.memory_space<vmem>>, vector<4x128xf32>
    %cst_60 = arith.constant 0.000000e+00 : f32
    %70 = vector.broadcast %cst_60 : f32 to vector<4x128xf32>
    %71 = arith.subf %70, %63 : vector<4x128xf32>
    %72 = math.exp %71 : vector<4x128xf32>
    %cst_61 = arith.constant 1.000000e+00 : f32
    %73 = vector.broadcast %cst_61 : f32 to vector<4x128xf32>
    %74 = arith.addf %73, %72 : vector<4x128xf32>
    %cst_62 = arith.constant 1.000000e+00 : f32
    %75 = vector.broadcast %cst_62 : f32 to vector<4x128xf32>
    %76 = arith.divf %75, %74 : vector<4x128xf32>
    %77 = arith.mulf %63, %76 : vector<4x128xf32>
    %cst_63 = arith.constant dense<0.000000e+00> : vector<4x128xf32>
    %78 = tpu.matmul %77, %66, %cst_63 {dimension_numbers = #tpu.dot_dimension_numbers<[1], [0], [0], [1], [0, 0, 1, 1], [], []>} : vector<4x128xf32>, vector<128x128xf32>, vector<4x128xf32> -> vector<4x128xf32>
    %cst_64 = arith.constant dense<0.000000e+00> : vector<4x128xf32>
    %79 = tpu.matmul %63, %67, %cst_64 {dimension_numbers = #tpu.dot_dimension_numbers<[1], [0], [0], [1], [0, 0, 1, 1], [], []>} : vector<4x128xf32>, vector<128x128xf32>, vector<4x128xf32> -> vector<4x128xf32>
    %80 = arith.addf %78, %79 : vector<4x128xf32>
    %81 = vector.broadcast %68 : vector<1x128xf32> to vector<4x128xf32>
    %82 = arith.addf %80, %81 : vector<4x128xf32>
    %cst_65 = arith.constant dense<0.000000e+00> : vector<4x128xf32>
    %83 = tpu.matmul %65, %82, %cst_65 {dimension_numbers = #tpu.dot_dimension_numbers<[1], [0], [0], [1], [0, 0, 1, 1], [], []>} : vector<4x4xf32>, vector<4x128xf32>, vector<4x128xf32> -> vector<4x128xf32>
    %cst_66 = arith.constant 5.000000e-01 : f32
    %84 = vector.broadcast %cst_66 : f32 to vector<4x128xf32>
    %85 = arith.cmpf olt, %69, %84 : vector<4x128xf32>
    %cst_67 = arith.constant 0.000000e+00 : f32
    %86 = vector.broadcast %cst_67 : f32 to vector<4x128xf32>
    %87 = arith.cmpf ogt, %83, %86 : vector<4x128xf32>
    %88 = arith.andi %85, %87 : vector<4x128xi1>
    %cst_68 = arith.constant 2.000000e+00 : f32
    %89 = vector.broadcast %cst_68 : f32 to vector<4x128xf32>
    %90 = arith.mulf %83, %89 : vector<4x128xf32>
    %cst_69 = arith.constant 0.000000e+00 : f32
    %91 = vector.broadcast %cst_69 : f32 to vector<4x128xf32>
    %92 = arith.select %88, %90, %91 : vector<4x128xi1>, vector<4x128xf32>
    %c0_70 = arith.constant 0 : index
    %c0_71 = arith.constant 0 : index
    %93 = vector.load %arg18[%c0_70, %c0_71] : memref<4x128xf32, #tpu.memory_space<vmem>>, vector<4x128xf32>
    tpu.vector_store %arg18[%c0_70, %c0_71], %92 {strides = array<i32>} : memref<4x128xf32, #tpu.memory_space<vmem>>, vector<4x128xf32>,
    return
  }
}

</mosaic_0001>

<bundles_post_ra>
// kernel: hgnn_forward.3
= control target key start
LH: loop header
LB: loop body
LE: loop exit
PB: predicated region body
PF: predicated region fallthrough
CT: control target
= control target key end

     0   :  { %s2505_s0 = inlined_call_operand.vmem [shape: f32[16,128], index: 0, kind: input, shape index: {}]   ;;  %s2506_s1 = inlined_call_operand.vmem [shape: f32[16,16], index: 1, kind: input, shape index: {}]   ;;  %s2507_s2 = inlined_call_operand.vmem [shape: f32[8,16], index: 2, kind: input, shape index: {}]   ;;  %s2508_s3 = inlined_call_operand.vmem [shape: f32[16,8], index: 3, kind: input, shape index: {}]   ;;  %s2509_s4 = inlined_call_operand.vmem [shape: f32[4,8], index: 4, kind: input, shape index: {}]   ;;  %s2510_s5 = inlined_call_operand.vmem [shape: f32[8,4], index: 5, kind: input, shape index: {}]   ;;  %s2511_s6 = inlined_call_operand.vmem [shape: f32[128,128], index: 6, kind: input, shape index: {}]   ;;  %s2512_s7 = inlined_call_operand.vmem [shape: f32[128,128], index: 7, kind: input, shape index: {}]   ;;  %s2513_s8 = inlined_call_operand.vmem [shape: f32[1,128], index: 8, kind: input, shape index: {}]   ;;  %s2514_s9 = inlined_call_operand.vmem [shape: f32[128,128], index: 9, kind: input, shape index: {}]   ;;  %s2515_s10 = inlined_call_operand.vmem [shape: f32[128,128], index: 10, kind: input, shape index: {}]   ;;  %s2516_s11 = inlined_call_operand.vmem [shape: f32[1,128], index: 11, kind: input, shape index: {}]   ;;  %s2517_s12 = inlined_call_operand.vmem [shape: f32[128,128], index: 12, kind: input, shape index: {}]   ;;  %s2518_s13 = inlined_call_operand.vmem [shape: f32[128,128], index: 13, kind: input, shape index: {}]   ;;  %s2519_s14 = inlined_call_operand.vmem [shape: f32[1,128], index: 14, kind: input, shape index: {}]   ;;  %s2520_s15 = inlined_call_operand.vmem [shape: f32[16,128], index: 15, kind: input, shape index: {}]   ;;  %s2521_s16 = inlined_call_operand.vmem [shape: f32[8,128], index: 16, kind: input, shape index: {}]   ;;  %s2522_s17 = inlined_call_operand.vmem [shape: f32[4,128], index: 17, kind: input, shape index: {}]   ;;  %s2523_s18 = inlined_call_operand.hbm [shape: f32[4,128], index: 18, kind: output, shape index: {}]  }
   0x1   :  { %2526 = sst [smem:[#allocation5_spill]] %s2505_s0 }
   0x2   :  { %2527 = sst [smem:[#allocation6_spill]] %s2506_s1 }
   0x3   :  { %2528 = sst [smem:[#allocation7_spill]] %s2507_s2 }
   0x4   :  { %v80_v0 = vld [vmem:[%s2512_s7] sm:$0xff]  ;;  %v81_v1 = vld [vmem:[%s2512_s7 + $0x8] sm:$0xff]  ;;  %v82_v2 = vld [vmem:[%s2512_s7 + $0x10] sm:$0xff]  ;;  %s2529_s26 = sld [smem:[#allocation5_spill]] }
   0x5   :  { %v1760_v3 = vpack.c.bf16 %v81_v1, %v80_v0  ;;  %v83_v4 = vld [vmem:[%s2512_s7 + $0x18] sm:$0xff]  ;;  %v84_v6 = vld [vmem:[%s2512_s7 + $0x20] sm:$0xff]  ;;  %v85_v7 = vld [vmem:[%s2512_s7 + $0x28] sm:$0xff] }
   0x6   :  { %v1764_v5 = vpack.c.bf16 %v83_v4, %v82_v2  ;;  %v1768_v8 = vpack.c.bf16 %v85_v7, %v84_v6  ;;  %v86_v10 = vld [vmem:[%s2512_s7 + $0x30] sm:$0xff]  ;;  %v87_v11 = vld [vmem:[%s2512_s7 + $0x38] sm:$0xff]  ;;  %v88_v15 = vld [vmem:[%s2512_s7 + $0x40] sm:$0xff] }
   0x7   :  { %1761 = vmatprep.subr.bf16.mxu0 %v1760_v3  ;;  %v1772_v14 = vpack.c.bf16 %v87_v11, %v86_v10  ;;  %v89_v16 = vld [vmem:[%s2512_s7 + $0x48] sm:$0xff] }
   0x8   :  { %1763 = vmatpush3.bf16.msra.mxu0 %v1760_v3 }
   0x9   :  { %1765 = vmatprep.subr.bf16.mxu0 %v1764_v5 }
   0xa   :  { %v60_v9 = vld [vmem:[%s2529_s26] sm:$0xff] }
   0xb   :  { %v99_v12 = vsub.f32 0.0, %v60_v9  ;;  %1529 = vmatprep.mubr.f32.mxu0 %v60_v9 }
   0xc   :  { %1767 = vmatpush3.bf16.msra.mxu0 %v1764_v5 }
   0xd   :  { %v101_v13 = vmul.f32 1.442695, %v99_v12  ;;  %1769 = vmatprep.subr.bf16.mxu0 %v1768_v8 }
   0xf   :  { %1940 = vpow2.f32 %v101_v13 }
  0x10   :  { %23 = vsyncpa [#allocation3], 0  ;;  %1771 = vmatpush3.bf16.msra.mxu0 %v1768_v8  ;;  %v1776_v17 = vpack.c.bf16 %v89_v16, %v88_v15  ;;  %v90_v18 = vld [vmem:[%s2512_s7 + $0x50] sm:$0xff]  ;;  %v91_v19 = vld [vmem:[%s2512_s7 + $0x58] sm:$0xff]  ;;  %s2530_s2 = sld [smem:[#allocation6_spill]]  ;;  %vm271_vm0 = vcmask 130048  }
  0x11   :  { %1773 = vmatprep.subr.bf16.mxu0 %v1772_v14  ;;  %v1780_v20 = vpack.c.bf16 %v91_v19, %v90_v18  ;;  %v92_v21 = vld [vmem:[%s2512_s7 + $0x60] sm:$0xff]  ;;  %v93_v22 = vld [vmem:[%s2512_s7 + $0x68] sm:$0xff]  ;;  %v94_v26 = vld [vmem:[%s2512_s7 + $0x70] sm:$0xff]  ;;  %v1980_v6 = vmov 0.0|0.0   ;;  %vm1981_vm1 = vmmov 0   ;;  %v1982_v7 = vmov 0.0  }
  0x12   :  { %v1784_v24 = vpack.c.bf16 %v93_v22, %v92_v21  ;;  %v95_v27 = vld [vmem:[%s2512_s7 + $0x78] sm:$0xff]  ;;  %v61_v28 = vld [vmem:[%s2529_s26 + $0x8] sm:$0xff]  ;;  %v64_v31 = vld [vmem:[%s2511_s6] sm:$0xff]  ;;  %s2531_s30 = sld [smem:[#allocation7_spill]]  ;;  %vm770_vm9 = vcmask 64512   ;;  %vm1259_vm13 = vcmask 1043456  }
  0x13   :  { %v1788_v29 = vpack.c.bf16 %v95_v27, %v94_v26  ;;  %v100_v30 = vsub.f32 0.0, %v61_v28  ;;  %v65_v32 = vld [vmem:[%s2511_s6 + $0x8] sm:$0xff]  ;;  %v66_v35 = vld [vmem:[%s2511_s6 + $0x10] sm:$0xff]  ;;  %v67_v36 = vld [vmem:[%s2511_s6 + $0x18] sm:$0xff]  ;;  %vm1255_vm14 = vcmask 31744   ;;  %s1983_s0 = smov [#allocation2]  }
  0x14   :  { %1775 = vmatpush3.bf16.msra.mxu0 %v1772_v14  ;;  %v1792_v33 = vpack.c.bf16 %v65_v32, %v64_v31  ;;  %v1796_v38 = vpack.c.bf16 %v67_v36, %v66_v35  ;;  %v68_v39 = vld [vmem:[%s2511_s6 + $0x20] sm:$0xff]  ;;  %v69_v40 = vld [vmem:[%s2511_s6 + $0x28] sm:$0xff]  ;;  %v70_v43 = vld [vmem:[%s2511_s6 + $0x30] sm:$0xff]  ;;  %s1345_s19 = sshll.u32 %s1983_s0, 4  ;;  %s1346_s19 = int_to_ptr.vmem [resolvable:$true] %s1345_s19 }
  0x15   :  { %1777 = vmatprep.subr.bf16.mxu0 %v1776_v17  ;;  %v103_v34 = vmul.f32 1.442695, %v100_v30  ;;  %v1800_v42 = vpack.c.bf16 %v69_v40, %v68_v39  ;;  %v71_v44 = vld [vmem:[%s2511_s6 + $0x38] sm:$0xff]  ;;  %v72_v46 = vld [vmem:[%s2511_s6 + $0x40] sm:$0xff]  ;;  %v73_v47 = vld [vmem:[%s2511_s6 + $0x48] sm:$0xff]  ;;  %p1961_p1 = scmp.lt.s32.totalorder %s1346_s19, %s1346_s19 }
  0x16   :  { %v1804_v45 = vpack.c.bf16 %v71_v44, %v70_v43  ;;  %v1808_v49 = vpack.c.bf16 %v73_v47, %v72_v46  ;;  %v74_v51 = vld [vmem:[%s2511_s6 + $0x50] sm:$0xff]  ;;  %v75_v52 = vld [vmem:[%s2511_s6 + $0x58] sm:$0xff]  ;;  %v76_v54 = vld [vmem:[%s2511_s6 + $0x60] sm:$0xff] }
  0x17   :  { %v1812_v53 = vpack.c.bf16 %v75_v52, %v74_v51  ;;  %v77_v55 = vld [vmem:[%s2511_s6 + $0x68] sm:$0xff]  ;;  %v78_v57 = vld [vmem:[%s2511_s6 + $0x70] sm:$0xff]  ;;  %v79_v58 = vld [vmem:[%s2511_s6 + $0x78] sm:$0xff] }
  0x18   :  { %1779 = vmatpush3.bf16.msra.mxu0 %v1776_v17  ;;  %v1816_v56 = vpack.c.bf16 %v77_v55, %v76_v54  ;;  %v1820_v59 = vpack.c.bf16 %v79_v58, %v78_v57  ;;  %v62_v62 = vld [vmem:[%s2530_s2] sm:$0xff]  ;;  %v63_v5 = vld [vmem:[%s2530_s2 + $0x8] sm:$0xff]  ;;  %v601_v26 = vld [vmem:[%s2515_s10 + $0x18] sm:$0xff] }
  0x19   :  { %v1941_v23 = vpop.eup %1940  ;;  %1781 = vmatprep.subr.bf16.mxu0 %v1780_v20  ;;  %1571 = vmatprep.mubr.msk.f32.mxu1 %vm271_vm0, %v62_v62  ;;  %v1353_v63 = vld [vmem:[%s2513_s8] ss:$0 sm:$0xff]  ;;  %v98_v8 = vld [vmem:[%s2520_s15 + $0x8] sm:$0xff]  ;;  %v1833_v15 = vpack.c.bf16 %v63_v5, %v62_v62  ;;  %v608_v39 = vld [vmem:[%s2515_s10 + $0x50] sm:$0xff] }
  0x1a   :  { %v105_v25 = vadd.f32 1.0, %v1941_v23  ;;  %vm354_vm2 = vcmp.lt.f32.partialorder %v98_v8, 0.5  ;;  %v363_v16 = vld [vmem:[%s2531_s30] sm:$0xff]  ;;  %v365_v18 = vld [vmem:[%s2508_s3 + $0x8] sm:$0xff]  ;;  %v609_v40 = vld [vmem:[%s2515_s10 + $0x58] sm:$0xff] }
  0x1b   :  { %v364_v17 = vld [vmem:[%s2508_s3] sm:$0xff]  ;;  %v599_v21 = vld [vmem:[%s2515_s10 + $0x8] sm:$0xff]  ;;  %v613_v46 = vld [vmem:[%s2515_s10 + $0x78] sm:$0xff] }
  0x1c   :  { %1942 = vrcp.f32 %v105_v25  ;;  %1783 = vmatpush3.bf16.msra.mxu0 %v1780_v20  ;;  %v1836_v19 = vpack.c.bf16 %v365_v18, %v364_v17  ;;  %v598_v20 = vld [vmem:[%s2515_s10] sm:$0xff]  ;;  %v600_v25 = vld [vmem:[%s2515_s10 + $0x10] sm:$0xff]  ;;  %v603_v31 = vld [vmem:[%s2515_s10 + $0x28] sm:$0xff] }
  0x1d   :  { %1785 = vmatprep.subr.bf16.mxu0 %v1784_v24  ;;  %1944 = vpow2.f32 %v103_v34  ;;  %v602_v30 = vld [vmem:[%s2515_s10 + $0x20] sm:$0xff]  ;;  %v605_v34 = vld [vmem:[%s2515_s10 + $0x38] sm:$0xff]  ;;  %v611_v43 = vld [vmem:[%s2515_s10 + $0x68] sm:$0xff] }
  0x1e   :  { %v1845_v32 = vpack.c.bf16 %v603_v31, %v602_v30  ;;  %v606_v36 = vld [vmem:[%s2515_s10 + $0x40] sm:$0xff]  ;;  %v585_v54 = vld [vmem:[%s2514_s9 + $0x18] sm:$0xff]  ;;  %v587_v57 = vld [vmem:[%s2514_s9 + $0x28] sm:$0xff] }
  0x1f   :  { %v594_v8 = vld [vmem:[%s2514_s9 + $0x60] sm:$0xff]  ;;  %v1068_v31 = vld [vmem:[%s2517_s12 + $0x8] sm:$0xff] }
  0x20   :  { %1787 = vmatpush3.bf16.msra.mxu0 %v1784_v24  ;;  %v1839_v24 = vpack.c.bf16 %v599_v21, %v598_v20  ;;  %v1361_v20 = vld [vmem:[%s2516_s11] ss:$0 sm:$0xff] }
  0x21   :  { %1789 = vmatprep.subr.bf16.mxu0 %v1788_v29  ;;  %v1067_v30 = vld [vmem:[%s2517_s12] sm:$0xff] }
  0x24   :  { %1791 = vmatpush3.bf16.msra.mxu0 %v1788_v29  ;;  %v1842_v29 = vpack.c.bf16 %v601_v26, %v600_v25 }
  0x25   :  { %1793 = vmatprep.subr.bf16.mxu0 %v1792_v33 }
  0x26   :  { %v1943_v37 = vpop.eup %1942 }
  0x27   :  { %v111_v41 = vmul.f32 %v1943_v37, %v60_v9  ;;  %1530 = vmatmul.mubr.f32.vlgmr.msra.gmra.mrb[0].mxu0 %v61_v28  ;;  %v1945_v48 = vpop.eup %1944  ;;  %v97_v9 = vld [vmem:[%s2520_s15] sm:$0xff]  ;;  %v607_v37 = vld [vmem:[%s2515_s10 + $0x48] sm:$0xff] }
  0x28   :  { %1795 = vmatpush3.bf16.msra.mxu0 %v1792_v33  ;;  %v106_v50 = vadd.f32 1.0, %v1945_v48  ;;  %vm353_vm3 = vcmp.lt.f32.partialorder %v97_v9, 0.5  ;;  %v604_v33 = vld [vmem:[%s2515_s10 + $0x30] sm:$0xff]  ;;  %v595_v9 = vld [vmem:[%s2514_s9 + $0x68] sm:$0xff] }
  0x29   :  { %1564 = vmatprep.mubr.f32.mxu0 %v111_v41  ;;  %1797 = vmatprep.subr.bf16.mxu0 %v1796_v38  ;;  %v1848_v35 = vpack.c.bf16 %v605_v34, %v604_v33  ;;  %v1854_v41 = vpack.c.bf16 %v609_v40, %v608_v39  ;;  %v1069_v33 = vld [vmem:[%s2517_s12 + $0x10] sm:$0xff]  ;;  %v1070_v34 = vld [vmem:[%s2517_s12 + $0x18] sm:$0xff] }
  0x2a   :  { %1946 = vrcp.f32 %v106_v50  ;;  %v583_v50 = vld [vmem:[%s2514_s9 + $0x8] sm:$0xff]  ;;  %v1073_v40 = vld [vmem:[%s2517_s12 + $0x30] sm:$0xff] }
  0x2c   :  { %1799 = vmatpush3.bf16.msra.mxu0 %v1796_v38  ;;  %v1851_v38 = vpack.c.bf16 %v607_v37, %v606_v36  ;;  %v1914_v36 = vpack.c.bf16 %v1070_v34, %v1069_v33  ;;  %v1071_v37 = vld [vmem:[%s2517_s12 + $0x20] sm:$0xff] }
  0x2d   :  { %1801 = vmatprep.subr.bf16.mxu0 %v1800_v42 }
  0x30   :  { %1803 = vmatpush3.bf16.msra.mxu0 %v1800_v42  ;;  %v610_v42 = vld [vmem:[%s2515_s10 + $0x60] sm:$0xff] }
  0x31   :  { %1805 = vmatprep.subr.bf16.mxu0 %v1804_v45  ;;  %v1857_v44 = vpack.c.bf16 %v611_v43, %v610_v42  ;;  %v1075_v43 = vld [vmem:[%s2517_s12 + $0x40] sm:$0xff] }
  0x34   :  { %1807 = vmatpush3.bf16.msra.mxu0 %v1804_v45  ;;  %v1947_v60 = vpop.eup %1946  ;;  %v612_v45 = vld [vmem:[%s2515_s10 + $0x70] sm:$0xff] }
  0x35   :  { %1809 = vmatprep.subr.bf16.mxu0 %v1808_v49  ;;  %v112_v61 = vmul.f32 %v1947_v60, %v61_v28  ;;  %v1860_v48 = vpack.c.bf16 %v613_v46, %v612_v45  ;;  %v589_v60 = vld [vmem:[%s2514_s9 + $0x38] sm:$0xff]  ;;  %v1077_v46 = vld [vmem:[%s2517_s12 + $0x50] sm:$0xff] }
  0x38   :  { %1811 = vmatpush3.bf16.msra.mxu0 %v1808_v49  ;;  %v582_v49 = vld [vmem:[%s2514_s9] sm:$0xff] }
  0x39   :  { %1813 = vmatprep.subr.bf16.mxu0 %v1812_v53  ;;  %v1863_v52 = vpack.c.bf16 %v583_v50, %v582_v49  ;;  %v1079_v49 = vld [vmem:[%s2517_s12 + $0x60] sm:$0xff]  ;;  %v1080_v50 = vld [vmem:[%s2517_s12 + $0x68] sm:$0xff] }
  0x3c   :  { %1815 = vmatpush3.bf16.msra.mxu0 %v1812_v53  ;;  %v584_v53 = vld [vmem:[%s2514_s9 + $0x10] sm:$0xff] }
  0x3d   :  { %1817 = vmatprep.subr.bf16.mxu0 %v1816_v56  ;;  %v1866_v55 = vpack.c.bf16 %v585_v54, %v584_v53  ;;  %v1082_v53 = vld [vmem:[%s2517_s12 + $0x78] sm:$0xff] }
  0x40   :  { %1819 = vmatpush3.bf16.msra.mxu0 %v1816_v56  ;;  %v586_v56 = vld [vmem:[%s2514_s9 + $0x20] sm:$0xff] }
  0x41   :  { %1821 = vmatprep.subr.bf16.mxu0 %v1820_v59  ;;  %v1869_v58 = vpack.c.bf16 %v587_v57, %v586_v56  ;;  %v1084_v56 = vld [vmem:[%s2518_s13 + $0x8] sm:$0xff] }
  0x44   :  { %1823 = vmatpush3.bf16.msra.mxu0 %v1820_v59  ;;  %v588_v59 = vld [vmem:[%s2514_s9 + $0x30] sm:$0xff] }
  0x45   :  { %1665 = vmatprep.subr.mxu0 %v1982_v7 }
  0x47   :  { %1565 = vmatmul.mubr.f32.vlgmr.msra.gmra.mrb[0].mxu0 %v112_v61  ;;  %v1872_v61 = vpack.c.bf16 %v589_v60, %v588_v59 }
  0x48   :  { %1667 = vmatprep.mubr.msk.f32.mxu0 %vm1981_vm1, %v1982_v7 }
 0x11a   :  { %v1566_v0 = vpop.f32.mrb[0].mxu0 }
 0x11b   :  { %v270_v1 = vadd.f32 %v1566_v0, %v1353_v63  ;;  %v254_v2 = vpop.f32.mrb[1].mxu0  ;;  %v591_v0 = vld [vmem:[%s2514_s9 + $0x48] sm:$0xff] }
 0x11c   :  { %v269_v3 = vadd.f32 %v1353_v63, %v254_v2  ;;  %v590_v63 = vld [vmem:[%s2514_s9 + $0x40] sm:$0xff] }
 0x11d   :  { %v1875_v2 = vpack.c.bf16 %v591_v0, %v590_v63  ;;  %v1086_v63 = vld [vmem:[%s2518_s13 + $0x18] sm:$0xff] }
 0x11e   :  { %v1824_v4 = vpack.c.bf16 %v270_v1, %v269_v3  ;;  %v592_v3 = vld [vmem:[%s2514_s9 + $0x50] sm:$0xff] }
 0x120   :  { %1825 = vmatprep.subr.bf16.mxu1 %v1824_v4 }
 0x121   :  { %1827 = vmatpush3.bf16.msra.mxu1 %v1824_v4  ;;  %v593_v4 = vld [vmem:[%s2514_s9 + $0x58] sm:$0xff] }
 0x122   :  { %1828 = vmatprep.subr.bf16.mxu1 %v1980_v6 }
 0x124   :  { %1572 = vmatmul.mubr.msk.f32.vlgmr.msra.gmra.mrb[0].mxu1 %vm271_vm0, %v63_v5  ;;  %v1878_v5 = vpack.c.bf16 %v593_v4, %v592_v3  ;;  %v1087_v3 = vld [vmem:[%s2518_s13 + $0x20] sm:$0xff]  ;;  %v1088_v4 = vld [vmem:[%s2518_s13 + $0x28] sm:$0xff] }
 0x125   :  { %1578 = vmatprep.mubr.msk.f32.mxu1 %vm1981_vm1, %v1982_v7 }
 0x1f7   :  { %v1573_v10 = vpop.f32.mrb[0].mxu1 }
 0x1f8   :  { %vm356_vm4 = vcmp.gt.f32.partialorder %v1573_v10, 0.0  ;;  %v360_v11 = vmul.f32 2.0, %v1573_v10  ;;  %v344_v12 = vpop.f32.mrb[1].mxu1  ;;  %v1881_v10 = vpack.c.bf16 %v595_v9, %v594_v8  ;;  %v1089_v8 = vld [vmem:[%s2518_s13 + $0x30] sm:$0xff]  ;;  %v1090_v9 = vld [vmem:[%s2518_s13 + $0x38] sm:$0xff] }
 0x1f9   :  { %vm358_vm5 = vmand %vm354_vm2, %vm356_vm4  ;;  %vm355_vm6 = vcmp.gt.f32.partialorder %v344_v12, 0.0  ;;  %v359_v13 = vmul.f32 2.0, %v344_v12  ;;  %v597_v12 = vld [vmem:[%s2514_s9 + $0x78] sm:$0xff] }
 0x1fa   :  { %vm357_vm7 = vmand %vm353_vm3, %vm355_vm6 }
 0x1fb   :  { %v1829_v14 = vpack.c.bf16 %v360_v11, %v359_v13  ;;  %vm1830_vm8 = vmpackc.low %vm358_vm5, %vm357_vm7  ;;  %v596_v11 = vld [vmem:[%s2514_s9 + $0x70] sm:$0xff] }
 0x1fc   :  { %v1884_v13 = vpack.c.bf16 %v597_v12, %v596_v11  ;;  %v1091_v12 = vld [vmem:[%s2518_s13 + $0x40] sm:$0xff] }
 0x1fd   :  { %1831 = vmatpush3.bf16.msk.msra.mxu1 %vm1830_vm8, %v1829_v14 }
 0x1fe   :  { %1832 = vmatprep.subr.bf16.mxu1 %v1980_v6 }
 0x200   :  { %1579 = vmatmul.mubr.msk.f32.vlgmr.msra.gmra.mrb[2].mxu1 %vm271_vm0, %v363_v16 }
 0x201   :  { %1834 = vmatpush3.bf16.msra.mxu1 %v1833_v15  ;;  %1585 = vmatprep.mubr.msk.f32.mxu1 %vm1981_vm1, %v1982_v7 }
 0x202   :  { %1835 = vmatprep.subr.bf16.mxu1 %v1980_v6 }
 0x204   :  { %1586 = vmatmul.mubr.msk.f32.vlgmr.msra.gmra.mrb[4].mxu1 %vm271_vm0, %v363_v16 }
 0x205   :  { %1592 = vmatprep.mubr.msk.f32.mxu1 %vm1981_vm1, %v1982_v7  ;;  %1837 = vmatpush3.bf16.msra.mxu1 %v1836_v19 }
 0x206   :  { %1838 = vmatprep.subr.bf16.mxu1 %v1980_v6 }
 0x2d3   :  { %v2228_v22 = vpop.f32.mrb[2].mxu1 }
 0x2d4   :  { %v1580_v23 = vpop.f32.mrb[3].mxu1  ;;  %v616_v47 = vsub.f32 0.0, %v2228_v22 }
 0x2d6   :  { %v617_v51 = vmul.f32 1.442695, %v616_v47  ;;  %v1078_v47 = vld [vmem:[%s2517_s12 + $0x58] sm:$0xff] }
 0x2d7   :  { %v505_v27 = vpop.f32.mrb[4].mxu1 }
 0x2d8   :  { %v1587_v28 = vpop.f32.mrb[5].mxu1  ;;  %1593 = vmatmul.mubr.msk.f32.vlgmr.msra.gmra.mrb[6].mxu1 %vm271_vm0, %v505_v27  ;;  %1948 = vpow2.f32 %v617_v51  ;;  %v1929_v51 = vpack.c.bf16 %v1080_v50, %v1079_v49 }
 0x2d9   :  { %1840 = vmatpush3.bf16.msra.mxu1 %v1839_v24  ;;  %1627 = vmatprep.mubr.msk.f32.mxu1 %vm1981_vm1, %v1982_v7 }
 0x2da   :  { %1841 = vmatprep.subr.bf16.mxu1 %v1980_v6 }
 0x2dd   :  { %1843 = vmatpush3.bf16.msra.mxu1 %v1842_v29  ;;  %v849_v29 = vld [vmem:[%s2509_s4] sm:$0xf] }
 0x2de   :  { %1844 = vmatprep.subr.bf16.mxu1 %v1980_v6 }
 0x2e1   :  { %1846 = vmatpush3.bf16.msra.mxu1 %v1845_v32  ;;  %v1911_v32 = vpack.c.bf16 %v1068_v31, %v1067_v30  ;;  %v1367_v31 = vld [vmem:[%s2519_s14] ss:$0 sm:$0xff]  ;;  %s1956_s14 = scalar_lea.vmem %s1346_s19, 64 }
 0x2e2   :  { %1847 = vmatprep.subr.bf16.mxu1 %v1980_v6  ;;  %v1949_v62 = vpop.eup %1948  ;;  %p1957_p0 = scmp.ne.s32.totalorder %s1346_s19, %s1956_s14  ;;  %p1962_p2 = scmp.lt.s32.totalorder %s1956_s14, %s1956_s14 }
 0x2e3   :  { %v619_v1 = vadd.f32 1.0, %v1949_v62  ;;  %v1085_v62 = vld [vmem:[%s2518_s13 + $0x10] sm:$0xff] }
 0x2e4   :  { %p1963_p3 = por %p1962_p2, %p1961_p1 }
 0x2e5   :  { %1849 = vmatpush3.bf16.msra.mxu1 %v1848_v35  ;;  %1950 = vrcp.f32 %v619_v1  ;;  %v850_v35 = vld [vmem:[%s2510_s5] sm:$0xff] }
 0x2e6   :  { %1850 = vmatprep.subr.bf16.mxu1 %v1980_v6  ;;  %p1964_p4 = pnand %p1963_p3, %p1957_p0 }
 0x2e9   :  { %1852 = vmatpush3.bf16.msra.mxu1 %v1851_v38  ;;  %v1072_v38 = vld [vmem:[%s2517_s12 + $0x28] sm:$0xff] }
 0x2ea   :  { %1853 = vmatprep.subr.bf16.mxu1 %v1980_v6  ;;  %v1917_v39 = vpack.c.bf16 %v1072_v38, %v1071_v37 }
 0x2ed   :  { %1855 = vmatpush3.bf16.msra.mxu1 %v1854_v41  ;;  %v1074_v41 = vld [vmem:[%s2517_s12 + $0x38] sm:$0xff] }
 0x2ee   :  { %1856 = vmatprep.subr.bf16.mxu1 %v1980_v6  ;;  %v1920_v42 = vpack.c.bf16 %v1074_v41, %v1073_v40 }
 0x2ef   :  { %v1951_v14 = vpop.eup %1950 }
 0x2f0   :  { %v622_v15 = vmul.f32 %v1951_v14, %v2228_v22 }
 0x2f1   :  { %1858 = vmatpush3.bf16.msra.mxu1 %v1857_v44  ;;  %v1076_v44 = vld [vmem:[%s2517_s12 + $0x48] sm:$0xff] }
 0x2f2   :  { %1859 = vmatprep.subr.bf16.mxu1 %v1980_v6  ;;  %v1923_v45 = vpack.c.bf16 %v1076_v44, %v1075_v43 }
 0x2f5   :  { %1861 = vmatpush3.bf16.msra.mxu1 %v1860_v48  ;;  %v1926_v48 = vpack.c.bf16 %v1078_v47, %v1077_v46 }
 0x2f6   :  { %1862 = vmatprep.subr.bf16.mxu1 %v1980_v6 }
 0x2f8   :  { %1628 = vmatmul.mubr.f32.vlgmr.msra.gmra.mrb[8].mxu1 %v2228_v22  ;;  %v615_v22 = vld [vmem:[%s2521_s16] sm:$0xff] }
 0x2f9   :  { %1864 = vmatpush3.bf16.msra.mxu1 %v1863_v52  ;;  %1662 = vmatprep.mubr.msk.f32.mxu1 %vm1981_vm1, %v1982_v7  ;;  %vm844_vm10 = vcmp.lt.f32.partialorder %v615_v22, 0.5  ;;  %v1081_v52 = vld [vmem:[%s2517_s12 + $0x70] sm:$0xff] }
 0x2fa   :  { %1865 = vmatprep.subr.bf16.mxu1 %v1980_v6  ;;  %v1932_v54 = vpack.c.bf16 %v1082_v53, %v1081_v52 }
 0x2fd   :  { %1867 = vmatpush3.bf16.msra.mxu1 %v1866_v55  ;;  %v1083_v55 = vld [vmem:[%s2518_s13] sm:$0xff] }
 0x2fe   :  { %1868 = vmatprep.subr.bf16.mxu1 %v1980_v6  ;;  %v1887_v60 = vpack.c.bf16 %v1084_v56, %v1083_v55 }
 0x301   :  { %1870 = vmatpush3.bf16.msra.mxu1 %v1869_v58 }
 0x302   :  { %1871 = vmatprep.subr.bf16.mxu1 %v1980_v6 }
 0x305   :  { %1873 = vmatpush3.bf16.msra.mxu1 %v1872_v61 }
 0x306   :  { %1874 = vmatprep.subr.bf16.mxu1 %v1980_v6 }
 0x309   :  { %1876 = vmatpush3.bf16.msra.mxu1 %v1875_v2  ;;  %v1890_v2 = vpack.c.bf16 %v1086_v63, %v1085_v62 }
 0x30a   :  { %1877 = vmatprep.subr.bf16.mxu1 %v1980_v6 }
 0x30d   :  { %1879 = vmatpush3.bf16.msra.mxu1 %v1878_v5  ;;  %v1893_v5 = vpack.c.bf16 %v1088_v4, %v1087_v3 }
 0x30e   :  { %1880 = vmatprep.subr.bf16.mxu1 %v1980_v6 }
 0x311   :  { %1882 = vmatpush3.bf16.msra.mxu1 %v1881_v10  ;;  %v1896_v10 = vpack.c.bf16 %v1090_v9, %v1089_v8 }
 0x312   :  { %1883 = vmatprep.subr.bf16.mxu1 %v1980_v6 }
 0x315   :  { %1885 = vmatpush3.bf16.msra.mxu1 %v1884_v13  ;;  %v1092_v13 = vld [vmem:[%s2518_s13 + $0x48] sm:$0xff] }
 0x316   :  { %1910 = vmatprep.subr.bf16.mxu1 %v1980_v6 }
 0x318   :  { %1663 = vmatmul.mubr.f32.vlgmr.msra.gmra.mrb[10].mxu1 %v622_v15  ;;  %v1899_v15 = vpack.c.bf16 %v1092_v13, %v1091_v12 }
 0x319   :  { %1752 = vmatprep.mubr.msk.f32.mxu1 %vm1981_vm1, %v1982_v7  ;;  %1912 = vmatpush3.bf16.msra.mxu1 %v1911_v32 }
 0x31a   :  { %1913 = vmatprep.subr.bf16.mxu1 %v1980_v6 }
 0x31d   :  { %1915 = vmatpush3.bf16.msra.mxu1 %v1914_v36 }
 0x31e   :  { %1916 = vmatprep.subr.bf16.mxu1 %v1980_v6 }
 0x321   :  { %1918 = vmatpush3.bf16.msra.mxu1 %v1917_v39 }
 0x322   :  { %1919 = vmatprep.subr.bf16.mxu1 %v1980_v6 }
 0x325   :  { %1921 = vmatpush3.bf16.msra.mxu1 %v1920_v42 }
 0x326   :  { %1922 = vmatprep.subr.bf16.mxu1 %v1980_v6 }
 0x329   :  { %1924 = vmatpush3.bf16.msra.mxu1 %v1923_v45 }
 0x32a   :  { %1925 = vmatprep.subr.bf16.mxu1 %v1980_v6 }
 0x32d   :  { %1927 = vmatpush3.bf16.msra.mxu1 %v1926_v48 }
 0x32e   :  { %1928 = vmatprep.subr.bf16.mxu1 %v1980_v6 }
 0x331   :  { %1930 = vmatpush3.bf16.msra.mxu1 %v1929_v51 }
 0x332   :  { %1931 = vmatprep.subr.bf16.mxu1 %v1980_v6 }
 0x335   :  { %1933 = vmatpush3.bf16.msra.mxu1 %v1932_v54 }
 0x3ab   :  { %v578_v16 = vpop.f32.mrb[6].mxu1 }
 0x3ac   :  { %v1594_v17 = vpop.f32.mrb[7].mxu1 }
 0x3ad   :  { %v1094_v17 = vld [vmem:[%s2518_s13 + $0x58] sm:$0xff] }
 0x3cb   :  { %v689_v18 = vpop.f32.mrb[8].mxu1 }
 0x3cc   :  { %v1629_v19 = vpop.f32.mrb[9].mxu1 }
 0x3cd   :  { %v1095_v19 = vld [vmem:[%s2518_s13 + $0x60] sm:$0xff] }
 0x3eb   :  { %v759_v21 = vpop.f32.mrb[10].mxu1 }
 0x3ec   :  { %v760_v23 = vadd.f32 %v759_v21, %v689_v18  ;;  %v1664_v24 = vpop.f32.mrb[11].mxu1 }
 0x3ed   :  { %v1098_v24 = vld [vmem:[%s2518_s13 + $0x78] sm:$0xff] }
 0x3ee   :  { %v769_v25 = vadd.f32 %v1361_v20, %v760_v23  ;;  %v1096_v20 = vld [vmem:[%s2518_s13 + $0x68] sm:$0xff]  ;;  %v1097_v23 = vld [vmem:[%s2518_s13 + $0x70] sm:$0xff] }
 0x3ef   :  { %v1905_v21 = vpack.c.bf16 %v1096_v20, %v1095_v19 }
 0x3f0   :  { %1666 = vmatpush3.msra.mxu0 %v769_v25 }
 0x3f1   :  { %1668 = vmatmul.mubr.msk.f32.vlgmr.msra.gmra.mrb[2].mxu0 %vm770_vm9, %v578_v16  ;;  %1670 = vmatprep.subr.mxu0 %v1982_v7 }
 0x3f2   :  { %1672 = vmatprep.mubr.msk.f32.mxu0 %vm1981_vm1, %v1982_v7 }
 0x4c4   :  { %v840_v26 = vpop.f32.mrb[2].mxu0 }
 0x4c5   :  { %vm845_vm11 = vcmp.gt.f32.partialorder %v840_v26, 0.0  ;;  %v847_v27 = vmul.f32 2.0, %v840_v26  ;;  %v1669_v28 = vpop.f32.mrb[3].mxu0  ;;  %v1908_v26 = vpack.c.bf16 %v1098_v24, %v1097_v23 }
 0x4c6   :  { %vm846_vm12 = vmand %vm844_vm10, %vm845_vm11 }
 0x4c7   :  { %1671 = vmatpush3.msk.msra.mxu0 %vm846_vm12, %v847_v27 }
 0x4c8   :  { %1673 = vmatmul.mubr.msk.f32.vlgmr.msra.gmra.mrb[4].mxu0 %vm770_vm9, %v849_v29  ;;  %1675 = vmatprep.subr.mxu0 %v1982_v7 }
 0x4c9   :  { %1676 = vmatpush3.msra.mxu0 %v578_v16  ;;  %1677 = vmatprep.mubr.msk.f32.mxu0 %vm1981_vm1, %v1982_v7  ;;  %v1093_v16 = vld [vmem:[%s2518_s13 + $0x50] sm:$0xff] }
 0x4ca   :  { %1680 = vmatprep.subr.mxu0 %v1982_v7  ;;  %v1902_v18 = vpack.c.bf16 %v1094_v17, %v1093_v16 }
 0x4cc   :  { %1678 = vmatmul.mubr.msk.f32.vlgmr.msra.gmra.mrb[6].mxu0 %vm770_vm9, %v849_v29 }
 0x4cd   :  { %1682 = vmatprep.mubr.msk.f32.mxu0 %vm1981_vm1, %v1982_v7  ;;  %1681 = vmatpush3.msra.mxu0 %v850_v35 }
 0x4ce   :  { %1886 = vmatprep.subr.bf16.mxu0 %v1980_v6 }
 0x59b   :  { %v920_v57 = vpop.f32.mrb[4].mxu0 }
 0x59c   :  { %v1101_v58 = vsub.f32 0.0, %v920_v57  ;;  %v1674_v59 = vpop.f32.mrb[5].mxu0 }
 0x59e   :  { %v1102_v61 = vmul.f32 1.442695, %v1101_v58 }
 0x59f   :  { %v990_v0 = vpop.f32.mrb[6].mxu0 }
 0x5a0   :  { %1952 = vpow2.f32 %v1102_v61  ;;  %v1679_v1 = vpop.f32.mrb[7].mxu0  ;;  %1683 = vmatmul.mubr.msk.f32.vlgmr.msra.gmra.mrb[8].mxu0 %vm770_vm9, %v990_v0 }
 0x5a1   :  { %1888 = vmatpush3.bf16.msra.mxu0 %v1887_v60  ;;  %1717 = vmatprep.mubr.msk.f32.mxu0 %vm1981_vm1, %v1982_v7 }
 0x5a2   :  { %1889 = vmatprep.subr.bf16.mxu0 %v1980_v6 }
 0x5a5   :  { %1891 = vmatpush3.bf16.msra.mxu0 %v1890_v2 }
 0x5a6   :  { %1892 = vmatprep.subr.bf16.mxu0 %v1980_v6 }
 0x5a9   :  { %1894 = vmatpush3.bf16.msra.mxu0 %v1893_v5 }
 0x5aa   :  { %v1953_v11 = vpop.eup %1952  ;;  %1895 = vmatprep.subr.bf16.mxu0 %v1980_v6 }
 0x5ab   :  { %v1104_v14 = vadd.f32 1.0, %v1953_v11 }
 0x5ad   :  { %1954 = vrcp.f32 %v1104_v14  ;;  %1897 = vmatpush3.bf16.msra.mxu0 %v1896_v10 }
 0x5ae   :  { %1898 = vmatprep.subr.bf16.mxu0 %v1980_v6 }
 0x5b1   :  { %1900 = vmatpush3.bf16.msra.mxu0 %v1899_v15 }
 0x5b2   :  { %1901 = vmatprep.subr.bf16.mxu0 %v1980_v6 }
 0x5b5   :  { %1903 = vmatpush3.bf16.msra.mxu0 %v1902_v18 }
 0x5b6   :  { %1904 = vmatprep.subr.bf16.mxu0 %v1980_v6 }
 0x5b7   :  { %v1955_v25 = vpop.eup %1954 }
 0x5b8   :  { %v1107_v22 = vmul.f32 %v1955_v25, %v920_v57 }
 0x5b9   :  { %1906 = vmatpush3.bf16.msra.mxu0 %v1905_v21 }
 0x5ba   :  { %1753 = vmatmul.mubr.f32.vlgmr.msra.gmra.mrb[12].mxu1 %v1107_v22  ;;  %1907 = vmatprep.subr.bf16.mxu0 %v1980_v6 }
 0x5bd   :  { %1909 = vmatpush3.bf16.msra.mxu0 %v1908_v26 }
 0x5be   :  { %1755 = vmatprep.subr.mxu0 %v1982_v7 }
 0x5c0   :  { %1718 = vmatmul.mubr.f32.vlgmr.msra.gmra.mrb[10].mxu0 %v920_v57 }
 0x5c1   :  { %1757 = vmatprep.mubr.msk.f32.mxu0 %vm1981_vm1, %v1982_v7  ;;  %v1100_v7 = vld [vmem:[%s2522_s17] sm:$0xf] }
 0x5c2   :  { %vm1333_vm15 = vcmp.lt.f32.partialorder %v1100_v7, 0.5 }
 0x673   :  { %v1063_v27 = vpop.f32.mrb[8].mxu0 }
 0x674   :  { %v1684_v28 = vpop.f32.mrb[9].mxu0 }
 0x68d   :  { %v1244_v29 = vpop.f32.mrb[12].mxu1 }
 0x68e   :  { %v1754_v30 = vpop.f32.mrb[13].mxu1 }
 0x693   :  { %v1174_v32 = vpop.f32.mrb[10].mxu0 }
 0x694   :  { %v1245_v33 = vadd.f32 %v1244_v29, %v1174_v32  ;;  %v1719_v34 = vpop.f32.mrb[11].mxu0 }
 0x696   :  { %v1254_v6 = vadd.f32 %v1367_v31, %v1245_v33 }
 0x698   :  { %1756 = vmatpush3.msk.msra.mxu0 %vm1259_vm13, %v1254_v6 }
 0x699   :  { %1758 = vmatmul.mubr.msk.f32.vlgmr.msra.gmra.mrb[12].mxu0 %vm1255_vm14, %v1063_v27 }
 0x76c   :  { %v1329_v35 = vpop.f32.mrb[12].mxu0 }
 0x76d   :  { %vm1334_vm0 = vcmp.gt.f32.partialorder %v1329_v35, 0.0  ;;  %v1336_v36 = vmul.f32 2.0, %v1329_v35  ;;  %v1759_v37 = vpop.f32.mrb[13].mxu0 }
 0x76e   :  { %vm1335_vm1 = vmand %vm1333_vm15, %vm1334_vm0 }
 0x76f   :  { %v1337_v38 = vsel %vm1335_vm1, %v1336_v36, 0.0 }
 0x770   :  { %1338 = vst [vmem:[#allocation2] sm:$0xf] %v1337_v38 }
 0x771   :  { %1967 = shalt.err (!%p1964_p4)
}
 0x772   :  { %s1968_s20 = scalar_lea.hbm %s2523_s18, 64 }
 0x773   :  { %p1969_p5 = scmp.ne.s32.totalorder %s2523_s18, %s1968_s20  ;;  %p1972_p6 = scmp.lt.u32.totalorder %s1968_s20, %s2523_s18 }
 0x775   :  { %p1974_p7 = pnand %p1972_p6, %p1969_p5 }
 0x777   :  { %1977 = shalt.err (!%p1974_p7)
}
 0x778   :  { %1348 = dma.vmem_to_hbm [thread:$0]  %s1346_s19, 64, %s2523_s18, [#allocation3]  }
 0x779   :  { %1978 = dma.done.wait [#allocation3], 64  }
 0x77a   :  { %1979 = vsyncadd [#allocation3], 4294967232 }
 0x77b   :  { %1352 = vsyncpa [#allocation3], 1 }

</bundles_post_ra>
